<compile_context>
chip_gen: v7x
topology: tpu7x:2x2x1
jax: 0.10.0
libtpu: 0.0.40
codegen_flags: <defaults>
</compile_context>

<pallas_src>
import functools

import jax
import jax.numpy as jnp
from jax import lax
from jax.experimental import pallas as pl
from jax.experimental.pallas import tpu as pltpu


def _fused_conv_kernel(p_ref, w_ref, b_ref, out_ref):
    # p_ref  : (KC, hw_tile)    im2col patches (contraction dim on sublanes)
    # w_ref  : (C_out, KC)      folded depthwise+pointwise weight
    # b_ref  : (C_out, 1)       folded bias, float32
    # out_ref: (C_out, hw_tile) lane-dense, already NCHW-flattened
    y = jnp.dot(w_ref[...], p_ref[...], preferred_element_type=jnp.float32)
    y = y + b_ref[...]
    out_ref[...] = y.astype(out_ref.dtype)


def depthwise_conv2d_pallas(x_nchw, w_dw, b_dw, w_pw, b_pw, *,
                            kernel_size, padding, stride,
                            compute_dtype=jnp.float32,
                            max_hw_tile=1024):
    """Forward of DepthWiseConv2d.

    x_nchw: (N, C_in, H, W)        (PyTorch NCHW convention)
    w_dw:   (C_out, 1, k, k)       depthwise conv weight (groups = C_in)
    b_dw:   (C_out,)
    w_pw:   (C_out, C_out, 1, 1)   pointwise 1x1 conv weight
    b_pw:   (C_out,)
    returns (N, C_out, H_out, W_out)
    """
    n, c_in, h, w = x_nchw.shape
    c_out = w_dw.shape[0]
    assert c_out % c_in == 0
    mult = c_out // c_in
    k = kernel_size
    s = stride
    h_out = (h + 2 * padding - k) // s + 1
    w_out = (w + 2 * padding - k) // s + 1
    hw = h_out * w_out
    kk = k * k
    kc = kk * c_in

    # ---- fold depthwise taps + group mapping + pointwise weight (once) ----
    w_dw2 = w_dw.reshape(c_out, kk).astype(jnp.float32)            # (C_out, KK)
    w_pw2 = w_pw.reshape(c_out, c_out).astype(jnp.float32)         # (o2, o)
    group = jnp.arange(c_out) // mult                               # o -> input chan
    onehot = (group[:, None] == jnp.arange(c_in)[None, :]).astype(jnp.float32)
    tap_map = w_dw2[:, :, None] * onehot[:, None, :]                # (o, i, c)
    w_fold = jnp.einsum('po,oic->pic', w_pw2, tap_map).reshape(c_out, kc)
    b_fold = (w_pw2 @ b_dw.astype(jnp.float32)
              + b_pw.astype(jnp.float32)).reshape(c_out, 1)         # stays f32
    w_fold = w_fold.astype(compute_dtype)

    # ---- pad + strided tap views of the RAW C_in input (no channel repeat) ----
    xp = jnp.pad(x_nchw, ((0, 0), (0, 0),
                          (padding, padding), (padding, padding)))
    taps = []
    for kh in range(k):
        for kw in range(k):
            taps.append(lax.slice(
                xp, (0, 0, kh, kw),
                (n, c_in, kh + s * (h_out - 1) + 1, kw + s * (w_out - 1) + 1),
                (1, 1, s, s)))                                      # (N,C_in,Ho,Wo)
    p = jnp.stack(taps, axis=1)                                     # (N,KK,C_in,Ho,Wo)
    p = p.reshape(n, kc, hw).astype(compute_dtype)                  # HW on lanes

    # ---- HW tiling (lane axis) -> second parallel grid dim, bounded VMEM ----
    if hw <= max_hw_tile:
        hw_tile = hw            # full-dim block (allowed even if < 128)
        hw_pad = hw
    else:
        assert max_hw_tile % 128 == 0
        hw_tile = max_hw_tile
        hw_pad = pl.cdiv(hw, hw_tile) * hw_tile
        p = jnp.pad(p, ((0, 0), (0, 0), (0, hw_pad - hw)))

    grid = (n, hw_pad // hw_tile)

    out = pl.pallas_call(
        _fused_conv_kernel,
        out_shape=jax.ShapeDtypeStruct((n, c_out, hw_pad), x_nchw.dtype),
        grid_spec=pltpu.PrefetchScalarGridSpec(
            num_scalar_prefetch=0,
            grid=grid,
            in_specs=[
                pl.BlockSpec((None, kc, hw_tile), lambda b, t: (b, 0, t)),
                pl.BlockSpec((c_out, kc), lambda b, t: (0, 0)),
                pl.BlockSpec((c_out, 1), lambda b, t: (0, 0)),
            ],
            out_specs=pl.BlockSpec((None, c_out, hw_tile), lambda b, t: (b, 0, t)),
        ),
        compiler_params=pltpu.CompilerParams(
            dimension_semantics=("parallel", "parallel"),
            vmem_limit_bytes=64 * 1024 * 1024),
    )(p, w_fold, b_fold)

    # (N, C_out, HW) is already NCHW-flattened: just slice padding + reshape.
    out = out[:, :, :hw].reshape(n, c_out, h_out, w_out)
    return out


def _reference(x_nchw, w_dw, b_dw, w_pw, b_pw, *, padding, stride, c_in):
    """Pure-JAX reference (lax.conv) matching PyTorch Conv2d semantics."""
    y = lax.conv_general_dilated(
        x_nchw, w_dw, window_strides=(stride, stride),
        padding=((padding, padding), (padding, padding)),
        dimension_numbers=("NCHW", "OIHW", "NCHW"),
        feature_group_count=c_in)
    y = y + b_dw[None, :, None, None]
    y = lax.conv_general_dilated(
        y, w_pw, window_strides=(1, 1), padding=((0, 0), (0, 0)),
        dimension_numbers=("NCHW", "OIHW", "NCHW"))
    return y + b_pw[None, :, None, None]


if __name__ == "__main__":
    # Module config: DepthWiseConv2d(img_size=16, dim_in=4, dim_out=8,
    #                                kernel_size=3, padding=1, stride=2)
    img_size, dim_in, dim_out = 16, 4, 8
    kernel_size, padding, stride = 3, 1, 2
    batch = 2

    key = jax.random.PRNGKey(0)
    kx, k1, k2, k3, k4 = jax.random.split(key, 5)
    x = jax.random.normal(kx, (batch, dim_in, img_size, img_size), jnp.float32)
    w_dw = jax.random.normal(k1, (dim_out, 1, kernel_size, kernel_size), jnp.float32) * 0.1
    b_dw = jax.random.normal(k2, (dim_out,), jnp.float32) * 0.1
    w_pw = jax.random.normal(k3, (dim_out, dim_out, 1, 1), jnp.float32) * 0.1
    b_pw = jax.random.normal(k4, (dim_out,), jnp.float32) * 0.1

    ref = _reference(x, w_dw, b_dw, w_pw, b_pw,
                     padding=padding, stride=stride, c_in=dim_in)

    # f32 data path (exact check).
    fwd_f32 = jax.jit(functools.partial(
        depthwise_conv2d_pallas, kernel_size=kernel_size, padding=padding,
        stride=stride, compute_dtype=jnp.float32))
    out = fwd_f32(x, w_dw, b_dw, w_pw, b_pw)
    jax.block_until_ready(out)
    assert out.shape == (batch, dim_out, img_size // 2, img_size // 2), out.shape
    assert jnp.allclose(out, ref, atol=1e-4, rtol=1e-4), \
        float(jnp.max(jnp.abs(out - ref)))

    # bf16 data path (storage/MXU in bf16, f32 accumulation) -- v6e/v7x win.
    fwd_bf16 = jax.jit(functools.partial(
        depthwise_conv2d_pallas, kernel_size=kernel_size, padding=padding,
        stride=stride, compute_dtype=jnp.bfloat16))
    out_bf16 = fwd_bf16(x, w_dw, b_dw, w_pw, b_pw)
    jax.block_until_ready(out_bf16)
    assert jnp.allclose(out_bf16, ref, atol=3e-2, rtol=3e-2), \
        float(jnp.max(jnp.abs(out_bf16 - ref)))

    print("KERNEL_OK")
</pallas_src>

<mosaic_0001>
module attributes {stable_mosaic.version = 11 : i64} {
  func.func @_fused_conv_kernel(%arg0: i32, %arg1: i32, %arg2: memref<1x36x64xf32, #tpu.memory_space<vmem>>, %arg3: memref<8x36xf32, #tpu.memory_space<vmem>>, %arg4: memref<8x1xf32, #tpu.memory_space<vmem>>, %arg5: memref<1x8x64xf32, #tpu.memory_space<vmem>>) attributes {dimension_semantics = [#tpu.dimension_semantics<parallel>, #tpu.dimension_semantics<parallel>], iteration_bounds = array<i64: 2, 1>, scalar_prefetch = 0 : i64, scratch_operands = 0 : i64, tpu.core_type = #tpu.core_type<tc>, window_params = [{transform_indices = @transform_0, window_bounds = array<i64: 1, 36, 64>}, {pipeline_mode = #tpu.pipeline_mode<synchronous>, transform_indices = @transform_1, window_bounds = array<i64: 8, 36>}, {pipeline_mode = #tpu.pipeline_mode<synchronous>, transform_indices = @transform_2, window_bounds = array<i64: 8, 1>}, {transform_indices = @transform_3, window_bounds = array<i64: 1, 8, 64>}]} {
    %c0 = arith.constant 0 : index
    %c0_0 = arith.constant 0 : index
    %0 = vector.load %arg3[%c0, %c0_0] : memref<8x36xf32, #tpu.memory_space<vmem>>, vector<8x36xf32>
    %c0_1 = arith.constant 0 : index
    %c0_2 = arith.constant 0 : index
    %c0_3 = arith.constant 0 : index
    %1 = vector.load %arg2[%c0_1, %c0_2, %c0_3] : memref<1x36x64xf32, #tpu.memory_space<vmem>>, vector<1x36x64xf32>
    %2 = vector.shape_cast %1 : vector<1x36x64xf32> to vector<36x64xf32>
    %cst = arith.constant dense<0.000000e+00> : vector<8x64xf32>
    %3 = tpu.matmul %0, %2, %cst {dimension_numbers = #tpu.dot_dimension_numbers<[1], [0], [0], [1], [0, 0, 1, 1], [], []>} : vector<8x36xf32>, vector<36x64xf32>, vector<8x64xf32> -> vector<8x64xf32>
    %c0_4 = arith.constant 0 : index
    %c0_5 = arith.constant 0 : index
    %4 = vector.load %arg4[%c0_4, %c0_5] : memref<8x1xf32, #tpu.memory_space<vmem>>, vector<8x1xf32>
    %5 = vector.broadcast %4 : vector<8x1xf32> to vector<8x64xf32>
    %6 = arith.addf %3, %5 : vector<8x64xf32>
    %c0_6 = arith.constant 0 : index
    %c0_7 = arith.constant 0 : index
    %c0_8 = arith.constant 0 : index
    %7 = vector.load %arg5[%c0_6, %c0_7, %c0_8] : memref<1x8x64xf32, #tpu.memory_space<vmem>>, vector<1x8x64xf32>
    %8 = vector.shape_cast %7 : vector<1x8x64xf32> to vector<8x64xf32>
    %9 = vector.shape_cast %6 : vector<8x64xf32> to vector<1x8x64xf32>
    tpu.vector_store %arg5[%c0_6, %c0_7, %c0_8], %9 {strides = array<i32>} : memref<1x8x64xf32, #tpu.memory_space<vmem>>, vector<1x8x64xf32>,
    return
  }
  func.func @transform_0(%arg0: i32, %arg1: i32) -> (i32, i32, i32) {
    %c0_i32 = arith.constant 0 : i32
    %c0_i32_0 = arith.constant 0 : i32
    return %arg0, %c0_i32, %arg1 : i32, i32, i32
  }
  func.func @transform_1(%arg0: i32, %arg1: i32) -> (i32, i32) {
    %c0_i32 = arith.constant 0 : i32
    %c0_i32_0 = arith.constant 0 : i32
    %c0_i32_1 = arith.constant 0 : i32
    return %c0_i32, %c0_i32_0 : i32, i32
  }
  func.func @transform_2(%arg0: i32, %arg1: i32) -> (i32, i32) {
    %c0_i32 = arith.constant 0 : i32
    %c0_i32_0 = arith.constant 0 : i32
    %c0_i32_1 = arith.constant 0 : i32
    return %c0_i32, %c0_i32_0 : i32, i32
  }
  func.func @transform_3(%arg0: i32, %arg1: i32) -> (i32, i32, i32) {
    %c0_i32 = arith.constant 0 : i32
    %c0_i32_0 = arith.constant 0 : i32
    return %arg0, %c0_i32, %arg1 : i32, i32, i32
  }
}

</mosaic_0001>

<bundles_post_ra>
// kernel: mul.8
= control target key start
LH: loop header
LB: loop body
LE: loop exit
PB: predicated region body
PF: predicated region fallthrough
CT: control target
= control target key end

     0   :  { %vm16_vm0 = vcmask 64512   ;;  %s61_s0 = inlined_call_operand.vmem [shape: f32[8,3,3], index: 0, kind: input, shape index: {}]   ;;  %s62_s1 = inlined_call_operand.vmem [shape: f32[8,9], index: 1, kind: output, shape index: {}]  }
   0x1   :  { %v29_v0 = vld [vmem:[%s61_s0 + $0x8] sm:$0xf]  ;;  %v30_v1 = vld [vmem:[%s61_s0 + $0x4] sm:$0xf]  ;;  %v13_v2 = vld [vmem:[%s61_s0] sm:$0xf] }
   0x2   :  { %8 = vst [vmem:[#allocation0 + $0x10] sm:$0xf] %v29_v0  ;;  %12 = vst [vmem:[#allocation0 + $0x8] sm:$0xf] %v30_v1 }
   0x3   :  { %14 = vst [vmem:[#allocation0] sm:$0xf] %v13_v2 }
   0x9   :  { %v19_v4 = vld [vmem:[#allocation0 + $0x8] sm:$0x7]   ;;  %v24_v5 = vld [vmem:[#allocation0 + $0x10] sm:$0x7]  }
   0xa   :  { %v15_v3 = vld [vmem:[#allocation0] sm:$0x7]   ;;  %31 = vst.msk [vmem:[%s62_s1 + $0x3] sm:$0x7] %vm16_vm0, %v19_v4   ;;  %32 = vst.msk [vmem:[%s62_s1 + $0x6] sm:$0x7] %vm16_vm0, %v24_v5  }
   0xb   :  { %17 = vst.msk [vmem:[%s62_s1] sm:$0x7] %vm16_vm0, %v15_v3  }

// kernel: depthwise_conv2d_pallas.1
= control target key start
LH: loop header
LB: loop body
LE: loop exit
PB: predicated region body
PF: predicated region fallthrough
CT: control target
= control target key end

     0   :  { %8 = vsyncpa [#allocation3], 0  ;;  %s1024_s0 = inlined_call_operand.hbm [shape: f32[2,36,64], index: 0, kind: input, shape index: {}]   ;;  %s1025_s1 = inlined_call_operand.hbm [shape: f32[8,36], index: 1, kind: input, shape index: {}]   ;;  %s1026_s2 = inlined_call_operand.hbm [shape: f32[8,1], index: 2, kind: input, shape index: {}]   ;;  %s1027_s3 = inlined_call_operand.hbm [shape: f32[2,8,64], index: 3, kind: output, shape index: {}]  }
   0x1   :  { %10 = vsyncpa [#allocation3 + $0x1], 0 }
   0x2   :  { %11 = vsyncpa [#allocation6], 0 }
   0x3   :  { %12 = vsyncpa [#allocation4], 0 }
   0x4   :  { %14 = vsyncpa [#allocation4 + $0x1], 0  ;;  %s777_s12 = smov 0   ;;  %s779_s13 = smov 0  }
   0x5   :  { %s781_s14 = smov 0   ;;  %s783_s15 = smov 0  }
   0x6   :  { %s785_s16 = smov 0   ;;  %s787_s17 = smov 0  }
   0x7 LB: > { %s438_s18 = sadd.s32 4294967295, %s745_s17   ;;  %s439_s19 = sadd.s32 4294967294, %s745_s17   ;;  %s745_s17 = sphi %s787_s17, %s20_s17   ;;  %s741_s16 = sphi %s785_s16, %s1053_s16   ;;  %s737_s15 = sphi %s783_s15, %s1052_s15   ;;  %s733_s14 = sphi %s781_s14, %s1051_s14   ;;  %s729_s13 = sphi %s779_s13, %s1050_s13   ;;  %s725_s12 = sphi %s777_s12, %s1049_s12  }
   0x8   : > { %s41_s20 = sadd.s32 1, %s733_s14  ;;  %p48_p0 = scmp.ne.s32.totalorder %s733_s14, %s729_s13 }
   0x9   : > { %p49_p1 = scmp.eq.s32.totalorder %s745_s17, 0  ;;  %p54_p2 = scmp.ne.s32.totalorder %s729_s13, %s725_s12 }
   0xa   : > { %p815_p3 = scmp.eq.s32.totalorder %s438_s18, 0  ;;  %p122_p4 = scmp.eq.s32.totalorder %s438_s18, 1 }
   0xb   : > { %p819_p5 = por %p49_p1, %p48_p0  ;;  %p128_p6 = scmp.eq.s32.totalorder %s439_s19, 1 }
   0xc   : > { %s1034_s21 = scalar_select %p815_p3, 1, 0 }
   0xd   : > { %p825_p7 = por %p815_p3, %p54_p2  ;;  %p829_p8 = por %p122_p4, %p48_p0 }
   0xe   : > { %p833_p9 = por %p128_p6, %p54_p2  ;;  %p440_p10 = scmp.ge.s32.totalorder %s745_s17, 1 }
   0xf   : > { %s1036_s23 = scalar_select %p825_p7, 1, 0 }
  0x10   : > { %s1037_s24 = scalar_select %p829_p8, 1, 0 }
  0x11   : > { %s1038_s25 = scalar_select %p833_p9, 1, 0 }
  0x12   : > { %p135_p11 = scmp.lt.s32.totalorder %s745_s17, 3  ;;  %s747_s27 = smov [#allocation5]  }
  0x13   : > { %s148_s28 = sshll.u32 %s747_s27, 4  ;;  %p512_p1 = scmp.lt.s32.totalorder %s745_s17, 2  ;;  %s149_s28 = int_to_ptr.vmem [resolvable:$true] %s148_s28 }
  0x14   : > { %p840_p13 = pnand %p440_p10, %p135_p11  ;;  %s748_s30 = smov [#allocation7]  }
  0x15   : > { %p849_p4 = pnand %p512_p1, %p819_p5  ;;  %s159_s4 = sshll.u32 %s748_s30, 4  ;;  %s859_s4 = int_to_ptr.vmem [resolvable:$true] %s159_s4 }
  0x16   : > { %s1039_s26 = scalar_select %p840_p13, 1, 0 }
  0x17   : > { %p495_p0 = pneg %p840_p13  ;;  %s573_s8 = scalar_lea.hbm %s1025_s1, 128 }
  0x18   : > { %s1040_s29 = scalar_select %p849_p4, 1, 0 }
  0x19   : > { %p855_p2 = pnand %p495_p0, %p815_p3  ;;  %p574_p5 = scmp.ne.s32.totalorder %s1025_s1, %s573_s8 }
  0x1a   : > { %p580_p1 = scmp.lt.u32.totalorder %s573_s8, %s1025_s1 }
  0x1b   : > { %p575_p6 = pneg %p855_p2 }
  0x1d   : > { %p576_p10 = pnand %p575_p6, %p574_p5 }
  0x1f   : > { %p577_p11 = pneg %p576_p10 }
  0x21   : > { %p582_p0 = pnand %p580_p1, %p577_p11 }
  0x23   : > { %585 = shalt.err (!%p582_p0)
}
  0x24   : > { %s586_s19 = scalar_lea.vmem %s149_s28, 128  ;;  %p594_p3 = scmp.lt.s32.totalorder %s149_s28, %s149_s28 }
  0x25   : > { %p587_p12 = scmp.ne.s32.totalorder %s149_s28, %s586_s19  ;;  %p595_p7 = scmp.lt.s32.totalorder %s586_s19, %s586_s19 }
  0x27   : > { %p589_p9 = pnand %p587_p12, %p575_p6  ;;  %p596_p13 = por %p595_p7, %p594_p3 }
  0x29   : > { %p590_p8 = pneg %p589_p9 }
  0x2b   : > { %p597_p4 = pnand %p596_p13, %p590_p8 }
  0x2d   : > { %600 = shalt.err (!%p597_p4)
}
  0x2e   : > { %498 = dma.hbm_to_vmem [thread:$0]  (!%p855_p2), %s1025_s1, 128, %s149_s28, [#allocation6]  }
  0x2f   : > { %s601_s7 = scalar_lea.hbm %s1026_s2, 128 }
  0x30   : > { %p602_p9 = scmp.ne.s32.totalorder %s1026_s2, %s601_s7  ;;  %p608_p8 = scmp.lt.u32.totalorder %s601_s7, %s1026_s2 }
  0x32   : > { %p604_p3 = pnand %p602_p9, %p575_p6 }
  0x34   : > { %p605_p7 = pneg %p604_p3 }
  0x36   : > { %p610_p12 = pnand %p608_p8, %p605_p7 }
  0x38   : > { %613 = shalt.err (!%p610_p12)
}
  0x39   : > { %s614_s28 = scalar_lea.vmem %s859_s4, 128  ;;  %p622_p10 = scmp.lt.s32.totalorder %s859_s4, %s859_s4 }
  0x3a   : > { %p615_p13 = scmp.ne.s32.totalorder %s859_s4, %s614_s28  ;;  %p623_p11 = scmp.lt.s32.totalorder %s614_s28, %s614_s28 }
  0x3c   : > { %p617_p4 = pnand %p615_p13, %p575_p6  ;;  %p624_p1 = por %p623_p11, %p622_p10 }
  0x3e   : > { %p618_p5 = pneg %p617_p4 }
  0x40   : > { %p625_p0 = pnand %p624_p1, %p618_p5 }
  0x42   : > { %628 = shalt.err (!%p625_p0)
}
  0x43   : > { %501 = dma.hbm_to_vmem [thread:$0]  (!%p855_p2), %s1026_s2, 128, %s859_s4, [#allocation6]  }
  0x44   : > { %s32_s22 = sadd.s32 1, %s741_s16  ;;  %s170_s27 = sand.u32 1, %s733_s14  }
  0x45   : > { %p34_p6 = scmp.ge.s32.totalorder %s32_s22, 2  ;;  %s480_s30 = smul.u32 40, %s170_s27 }
  0x46   : > { %s481_s5 = smul.u32 640, %s741_s16  ;;  %s927_s28 = scalar_lea.sflag [#allocation3], %s170_s27 }
  0x47   : > { %s1055_s22 = smov (%p34_p6, %s32_s22), 0  ;;  %s174_s7 = scalar_lea.vmem [#allocation2], %s480_s30 }
  0x48   : > { %s36_s6 = ssub.s32 %s741_s16, %s1055_s22  ;;  %s182_s8 = sshll.u32 %s174_s7, 4  ;;  %s920_s8 = int_to_ptr.vmem [resolvable:$true] %s182_s8 }
  0x49   : > { %p39_p9 = scmp.eq.s32.totalorder %s36_s6, 0  ;;  %s918_s11 = scalar_lea.hbm %s1024_s0, %s481_s5 }
  0x4a   : > { %s629_s18 = scalar_lea.hbm %s918_s11, 640  ;;  %p1042_p3 = scmp.ne.s32.totalorder %s1040_s29, 0 }
  0x4b   : > { %s925_s4 = scalar_select %p39_p9, %s733_s14, %s41_s20  }
  0x4c   : > { %p630_p2 = scmp.ne.s32.totalorder %s918_s11, %s629_s18  ;;  %p631_p7 = pneg %p1042_p3 }
  0x4d   : > { %s634_s5 = scalar_lea.hbm %s1024_s0, 1280  ;;  %p635_p13 = scmp.lt.u32.totalorder %s918_s11, %s1024_s0 }
  0x4e   : > { %p632_p8 = pnand %p631_p7, %p630_p2  ;;  %p636_p4 = scmp.lt.u32.totalorder %s634_s5, %s629_s18 }
  0x4f   : > { %p638_p10 = scmp.lt.u32.totalorder %s629_s18, %s918_s11 }
  0x50   : > { %p633_p12 = pneg %p632_p8  ;;  %p637_p5 = por %p636_p4, %p635_p13 }
  0x52   : > { %p639_p11 = por %p638_p10, %p637_p5 }
  0x54   : > { %p640_p1 = pnand %p639_p11, %p633_p12 }
  0x56   : > { %643 = shalt.err (!%p640_p1)
}
  0x57   : > { %s644_s20 = scalar_lea.vmem %s920_s8, 640  ;;  %s749_s27 = smov [#allocation2]  }
  0x58   : > { %p645_p0 = scmp.ne.s32.totalorder %s920_s8, %s644_s20  ;;  %s649_s9 = sshll.u32 %s749_s27, 4  ;;  %s650_s9 = int_to_ptr.vmem [resolvable:$false] %s649_s9 }
  0x59   : > { %s651_s10 = scalar_lea.vmem %s650_s9, 1280  ;;  %p652_p2 = scmp.lt.s32.totalorder %s920_s8, %s650_s9 }
  0x5a   : > { %p647_p6 = pnand %p645_p0, %p631_p7  ;;  %p653_p8 = scmp.lt.s32.totalorder %s651_s10, %s644_s20 }
  0x5c   : > { %p648_p9 = pneg %p647_p6  ;;  %p654_p13 = por %p653_p8, %p652_p2 }
  0x5e   : > { %p655_p4 = pnand %p654_p13, %p648_p9 }
  0x60   : > { %658 = shalt.err (!%p655_p4)
}
  0x61   : > { %s750_s18 = smov 128   ;;  %s751_s19 = smov 8  }
  0x62   : > { %505 = dma.hbm_to_vmem [thread:$0]  (!%p1042_p3), %s918_s11, 640, %s920_s8, %s927_s28, %s750_s18, %s750_s18, %s751_s19  }
  0x63   : > { %p1043_p7 = scmp.ne.s32.totalorder %s1039_s26, 0 }
  0x64   : > { %s958_s30 = sand.u32 (!%p1043_p7), 1, %s729_s13   ;;  %p1044_p12 = scmp.ne.s32.totalorder (!%p1043_p7), %s1036_s23, 0 }
  0x65   : > { %194 = sbr.rel (%p1043_p7) target bundleno = 353 (0x161), region = 32  ;;  %s197_s6 = scalar_lea.sflag (!%p1043_p7), [#allocation3], %s958_s30 }
  0x66   : > { %s482_s5 = smul.u32 (!%p1043_p7), 40, %s958_s30 }
  0x68   : > { %s200_s7 = scalar_lea.vmem (!%p1043_p7), [#allocation2], %s482_s5 }
  0x6c   : > { %712 = dma.done.wait (%p1044_p12), %s197_s6, 640  }
  0x6d   : > { %714 = vsyncadd (%p1044_p12), %s197_s6, 4294966656  ;;  %p1045_p5 = scmp.ne.s32.totalorder %s1034_s21, 0 }
  0x6f   : > { %716 = dma.done.wait (%p1045_p5), [#allocation6], 256  }
  0x70   : > { %718 = vsyncadd (%p1045_p5), [#allocation6], 4294967040  ;;  %v752_v0 = vmov 0.0|0.0   ;;  %vm753_vm0 = vmmov 0   ;;  %v754_v1 = vmov 0.0   ;;  %v755_v2 = vmov 0  }
  0x71   : > { %474 = vmatprep.subr.bf16.mxu0 %v752_v0  ;;  %471 = vmatprep.mubr.msk.f32.mxu0 %vm753_vm0, %v754_v1  ;;  %v232_v3 = vld [vmem:[%s200_s7] sm:$0xff]  ;;  %v233_v4 = vld [vmem:[%s200_s7 + $0x8] sm:$0xff]  ;;  %v234_v5 = vld [vmem:[%s200_s7 + $0x10] sm:$0xff]  ;;  %vm247_vm1 = vcmask 1043456   ;;  %vm243_vm2 = vcmask 293888   ;;  %s448_s21 = sshll.u32 %s958_s30, 3 }
  0x72   : > { %572 = vset.pattern.permute.xlu0 %v755_v2  ;;  %v475_v6 = vpack.c.bf16 %v233_v4, %v232_v3  ;;  %v235_v7 = vld [vmem:[%s200_s7 + $0x18] sm:$0xff]  ;;  %v236_v10 = vld [vmem:[%s200_s7 + $0x20] sm:$0xf]  ;;  %v231_v11 = vld [vmem:[#allocation5] sm:$0xff]  ;;  %s452_s23 = sshll.u32 %s737_s15, 7  ;;  %s230_s26 = scalar_lea.vmem [#allocation8], %s448_s21 }
  0x73   : > { %v237_v8 = vld [vmem:[#allocation7] sm:$0xff]  ;;  %v478_v9 = vpack.c.bf16 %v235_v7, %v234_v5  ;;  %s338_s29 = sshll.u32 %s230_s26, 4  ;;  %vm321_vm3 = vcmask 523264   ;;  %s975_s28 = scalar_lea.hbm %s1027_s3, %s452_s23  ;;  %s977_s29 = int_to_ptr.vmem [resolvable:$true] %s338_s29 }
  0x74   : > { %476 = vmatpush3.bf16.msra.mxu0 %v475_v6  ;;  %240 = vperm.xlu0 %572, %v237_v8   ;;  %s324_s20 = scalar_lea.sflag [#allocation4], %s958_s30  ;;  %s659_s27 = scalar_lea.vmem %s977_s29, 128 }
  0x75   : > { %477 = vmatprep.subr.bf16.mxu0 %v752_v0  ;;  %p660_p3 = scmp.ne.s32.totalorder %s977_s29, %s659_s27  ;;  %p1046_p10 = scmp.ne.s32.totalorder %s1037_s24, 0 }
  0x76   : > { %s756_s15 = smov [#allocation8]  }
  0x77   : > { %p661_p11 = pnand %p660_p3, %p1046_p10  ;;  %s663_s9 = sshll.u32 %s756_s15, 4  ;;  %s664_s9 = int_to_ptr.vmem [resolvable:$false] %s663_s9 }
  0x78   : > { %479 = vmatpush3.bf16.msra.mxu0 %v478_v9  ;;  %s665_s10 = scalar_lea.vmem %s664_s9, 256  ;;  %p666_p0 = scmp.lt.s32.totalorder %s977_s29, %s664_s9 }
  0x79   : > { %469 = vmatprep.subr.mxu0 %v754_v1  ;;  %p662_p1 = pneg %p661_p11  ;;  %p667_p6 = scmp.lt.s32.totalorder %s665_s10, %s659_s27 }
  0x7b   : > { %p668_p9 = por %p667_p6, %p666_p0 }
  0x7c   : > { %470 = vmatpush3.msk.msra.mxu0 %vm247_vm1, %v236_v10 }
  0x7d   : > { %472 = vmatmul.mubr.msk.f32.vlgmr.msra.gmra.mrb[0].mxu0 %vm243_vm2, %v231_v11  ;;  %p669_p2 = pnand %p668_p9, %p662_p1 }
  0xf3   : > { %v241_v12 = vpop.permute.xlu0 %240 }
 0x150   : > { %v317_v13 = vpop.f32.mrb[0].mxu0 }
 0x151   : > { %v318_v14 = vadd.f32 %v317_v13, %v241_v12  ;;  %v473_v15 = vpop.f32.mrb[1].mxu0 }
 0x153   : > { %322 = vst.msk [vmem:[%s230_s26] sm:$0xff] %vm321_vm3, %v318_v14 }
 0x154   : > { %672 = shalt.err (!%p669_p2)
}
 0x155   : > { %s673_s18 = scalar_lea.hbm %s975_s28, 128  ;;  %s677_s5 = scalar_lea.hbm %s1027_s3, 256 }
 0x156   : > { %p674_p8 = scmp.ne.s32.totalorder %s975_s28, %s673_s18  ;;  %p678_p7 = scmp.lt.u32.totalorder %s975_s28, %s1027_s3 }
 0x157   : > { %p679_p12 = scmp.lt.u32.totalorder %s677_s5, %s673_s18  ;;  %p681_p3 = scmp.lt.u32.totalorder %s673_s18, %s975_s28 }
 0x158   : > { %p675_p13 = pnand %p674_p8, %p1046_p10 }
 0x159   : > { %p680_p5 = por %p679_p12, %p678_p7 }
 0x15a   : > { %p676_p4 = pneg %p675_p13 }
 0x15b   : > { %p682_p11 = por %p681_p3, %p680_p5 }
 0x15d   : > { %p683_p1 = pnand %p682_p11, %p676_p4 }
 0x15f   : > { %686 = shalt.err (!%p683_p1)
}
 0x160   : > { %493 = dma.vmem_to_hbm [thread:$0]  (%p1046_p10), %s977_s29, 128, %s975_s28, %s324_s20  }
 0x161 PF: > { %s350_s21 = sand.u32 1, %s725_s12   ;;  %p1047_p0 = scmp.ne.s32.totalorder %s1038_s25, 0 }
 0x162   : > { %p1048_p6 = scmp.ge.s32.totalorder %s745_s17, 2  ;;  %s351_s23 = scalar_lea.sflag [#allocation4], %s350_s21 }
 0x164   : > { %p507_p9 = pnand %p1048_p6, %p1047_p0 }
 0x166   : > { %720 = dma.done.wait (!%p507_p9), %s351_s23, 128  }
 0x167   : > { %722 = vsyncadd (!%p507_p9), %s351_s23, 4294967168  ;;  %s20_s17 = sadd.s32 1, %s745_s17   ;;  %s1049_s12 = smov %s729_s13 }
 0x168   : > { %p17_p2 = scmp.ge.s32.totalorder %s20_s17, 4   ;;  %s1050_s13 = smov %s733_s14 }
 0x169   : > { %s1051_s14 = smov %s925_s4  ;;  %s1052_s15 = smov %s741_s16 }
 0x16a   : > { %s1053_s16 = smov %s1055_s22  ;;  %19 = sbr.rel (!%p17_p2) target bundleno = 7 (0x7), region = 85 }
 0x171   :  { %356 = vsyncpa [#allocation3], 1 }
 0x172   :  { %358 = vsyncpa [#allocation3 + $0x1], 1 }
 0x173   :  { %359 = vsyncpa [#allocation6], 1 }
 0x174   :  { %360 = vsyncpa [#allocation4], 1 }
 0x175   :  { %362 = vsyncpa [#allocation4 + $0x1], 1 }

</bundles_post_ra>
